<compile_context>
chip_gen: v6e
topology: v6e:2x2x1
jax: 0.10.0
libtpu: 0.0.40
codegen_flags: <defaults>
</compile_context>

<pallas_src>
import jax
import jax.numpy as jnp
from jax.experimental import pallas as pl
from jax.experimental.pallas import tpu as pltpu

INPUT_DIM = 5
HIDDEN_DIM = 64
NUM_ACTIONS = 50

# Lane/sublane-dense padded dims.
K_PAD = 8     # input_dim  5  -> 8   (sublane multiple)
H_PAD = 128   # hidden     64 -> 128 (full lane width / full fc2 contraction)
N_PAD = 128   # actions    50 -> 128 (unmasked output stores)


def _mlp_kernel(x_ref, w1_ref, b1_ref, w2_ref, b2_ref, o_ref):
    # x tile arrives as bf16 (halves the dominant HBM traffic); compute in f32.
    x = x_ref[...].astype(jnp.float32)          # (TM, K_PAD)
    w1 = w1_ref[...]                            # (K_PAD, H_PAD) f32

    # fc1 as K_PAD broadcast-FMAs on the VPU (MXU would be >95% zero padding
    # for K=5 and pay a full push/pop round trip).
    h = b1_ref[...]                             # (1, H_PAD) broadcasts up
    for k in range(K_PAD):
        h = h + x[:, k:k + 1] * w1[k:k + 1, :]
    h = jnp.maximum(h, 0.0)                     # ReLU (VPU, f32)

    # fc2 on the MXU with f32 accumulation; padded hidden units are exactly 0
    # (zero weight cols + zero bias -> ReLU(0) = 0), so padding is inert.
    out = jnp.dot(h, w2_ref[...], preferred_element_type=jnp.float32)
    o_ref[...] = (out + b2_ref[...]).astype(o_ref.dtype)


def price_predict_forward(x, w1, b1, w2, b2, *, block_rows=512):
    """x: [B, 5] f32; w1: [5, 64]; b1: [1, 64]; w2: [64, 50]; b2: [1, 50]
    -> [B, 50] f32. Same math as relu(x @ W1 + b1) @ W2 + b2."""
    B = x.shape[0]
    tm = block_rows if B >= block_rows else max(8, ((B + 7) // 8) * 8)
    n_tiles = pl.cdiv(B, tm)
    b_pad = n_tiles * tm

    # Zero-pad everything to lane-dense shapes (padding contributes nothing).
    x_p = jnp.zeros((b_pad, K_PAD), jnp.bfloat16).at[:B, :INPUT_DIM].set(
        x.astype(jnp.bfloat16))
    w1_p = jnp.zeros((K_PAD, H_PAD), jnp.float32).at[:INPUT_DIM, :HIDDEN_DIM].set(w1)
    b1_p = jnp.zeros((1, H_PAD), jnp.float32).at[:, :HIDDEN_DIM].set(b1)
    w2_p = jnp.zeros((H_PAD, N_PAD), jnp.float32).at[:HIDDEN_DIM, :NUM_ACTIONS].set(w2)
    b2_p = jnp.zeros((1, N_PAD), jnp.float32).at[:, :NUM_ACTIONS].set(b2)

    flops = 2 * b_pad * (K_PAD * H_PAD + H_PAD * N_PAD)
    bytes_accessed = (x_p.size * 2 + (w1_p.size + b1_p.size + w2_p.size +
                                      b2_p.size) * 4 + b_pad * N_PAD * 4)

    out_p = pl.pallas_call(
        _mlp_kernel,
        out_shape=jax.ShapeDtypeStruct((b_pad, N_PAD), jnp.float32),
        grid_spec=pltpu.PrefetchScalarGridSpec(
            num_scalar_prefetch=0,
            grid=(n_tiles,),
            in_specs=[
                # x / out are indexed by the batch tile; weights & biases keep a
                # constant index_map so they stay resident in VMEM across tiles.
                pl.BlockSpec((tm, K_PAD), lambda i: (i, 0)),
                pl.BlockSpec((K_PAD, H_PAD), lambda i: (0, 0)),
                pl.BlockSpec((1, H_PAD), lambda i: (0, 0)),
                pl.BlockSpec((H_PAD, N_PAD), lambda i: (0, 0)),
                pl.BlockSpec((1, N_PAD), lambda i: (0, 0)),
            ],
            out_specs=pl.BlockSpec((tm, N_PAD), lambda i: (i, 0)),
        ),
        compiler_params=pltpu.CompilerParams(
            dimension_semantics=("parallel",)),
        cost_estimate=pl.CostEstimate(
            flops=flops, transcendentals=0, bytes_accessed=bytes_accessed),
    )(x_p, w1_p, b1_p, w2_p, b2_p)

    return out_p[:B, :NUM_ACTIONS]


def init_params(key):
    """Deterministic PyTorch-style (uniform +/- 1/sqrt(fan_in)) init."""
    k1, k2, k3, k4 = jax.random.split(key, 4)
    bound1 = 1.0 / jnp.sqrt(INPUT_DIM)
    bound2 = 1.0 / jnp.sqrt(HIDDEN_DIM)
    w1 = jax.random.uniform(k1, (INPUT_DIM, HIDDEN_DIM), jnp.float32, -bound1, bound1)
    b1 = jax.random.uniform(k2, (1, HIDDEN_DIM), jnp.float32, -bound1, bound1)
    w2 = jax.random.uniform(k3, (HIDDEN_DIM, NUM_ACTIONS), jnp.float32, -bound2, bound2)
    b2 = jax.random.uniform(k4, (1, NUM_ACTIONS), jnp.float32, -bound2, bound2)
    return w1, b1, w2, b2


if __name__ == "__main__":
    key = jax.random.PRNGKey(0)
    k_x, k_p = jax.random.split(key)

    batch = 8
    x = jax.random.normal(k_x, (batch, INPUT_DIM), jnp.float32)
    w1, b1, w2, b2 = init_params(k_p)

    out = price_predict_forward(x, w1, b1, w2, b2)
    out = jax.block_until_ready(out)

    # Reference in plain JAX. The kernel quantizes x to bf16 for HBM traffic,
    # so the exact-match reference uses the same quantized x; also sanity-check
    # against the full-f32 reference with a looser tolerance.
    x_q = x.astype(jnp.bfloat16).astype(jnp.float32)
    ref_q = jnp.maximum(x_q @ w1 + b1, 0.0) @ w2 + b2
    ref_f32 = jnp.maximum(x @ w1 + b1, 0.0) @ w2 + b2

    assert out.shape == (batch, NUM_ACTIONS)
    assert jnp.allclose(out, ref_q, atol=1e-4, rtol=1e-4)
    assert jnp.allclose(out, ref_f32, atol=5e-2, rtol=5e-2)

    print("KERNEL_OK")
</pallas_src>

<mosaic_0001>
module attributes {stable_mosaic.version = 11 : i64} {
  func.func @_mlp_kernel(%arg0: i32, %arg1: memref<8x8xbf16, #tpu.memory_space<vmem>>, %arg2: memref<8x128xf32, #tpu.memory_space<vmem>>, %arg3: memref<1x128xf32, #tpu.memory_space<vmem>>, %arg4: memref<128x128xf32, #tpu.memory_space<vmem>>, %arg5: memref<1x128xf32, #tpu.memory_space<vmem>>, %arg6: memref<8x128xf32, #tpu.memory_space<vmem>>) attributes {dimension_semantics = [#tpu.dimension_semantics<parallel>], iteration_bounds = array<i64: 1>, scalar_prefetch = 0 : i64, scratch_operands = 0 : i64, tpu.core_type = #tpu.core_type<tc>, window_params = [{transform_indices = @transform_0, window_bounds = array<i64: 8, 8>}, {pipeline_mode = #tpu.pipeline_mode<synchronous>, transform_indices = @transform_1, window_bounds = array<i64: 8, 128>}, {pipeline_mode = #tpu.pipeline_mode<synchronous>, transform_indices = @transform_2, window_bounds = array<i64: 1, 128>}, {pipeline_mode = #tpu.pipeline_mode<synchronous>, transform_indices = @transform_3, window_bounds = array<i64: 128, 128>}, {pipeline_mode = #tpu.pipeline_mode<synchronous>, transform_indices = @transform_4, window_bounds = array<i64: 1, 128>}, {transform_indices = @transform_5, window_bounds = array<i64: 8, 128>}]} {
    %c0 = arith.constant 0 : index
    %c0_0 = arith.constant 0 : index
    %0 = vector.load %arg1[%c0, %c0_0] : memref<8x8xbf16, #tpu.memory_space<vmem>>, vector<8x8xbf16>
    %1 = arith.extf %0 : vector<8x8xbf16> to vector<8x8xf32>
    %c0_1 = arith.constant 0 : index
    %c0_2 = arith.constant 0 : index
    %2 = vector.load %arg2[%c0_1, %c0_2] : memref<8x128xf32, #tpu.memory_space<vmem>>, vector<8x128xf32>
    %c0_3 = arith.constant 0 : index
    %c0_4 = arith.constant 0 : index
    %3 = vector.load %arg3[%c0_3, %c0_4] : memref<1x128xf32, #tpu.memory_space<vmem>>, vector<1x128xf32>
    %4 = vector.extract_strided_slice %1 {offsets = [0, 0], sizes = [8, 1], strides = [1, 1]} : vector<8x8xf32> to vector<8x1xf32>
    %5 = vector.extract_strided_slice %2 {offsets = [0, 0], sizes = [1, 128], strides = [1, 1]} : vector<8x128xf32> to vector<1x128xf32>
    %6 = vector.broadcast %4 : vector<8x1xf32> to vector<8x128xf32>
    %7 = vector.broadcast %5 : vector<1x128xf32> to vector<8x128xf32>
    %8 = arith.mulf %6, %7 : vector<8x128xf32>
    %9 = vector.broadcast %3 : vector<1x128xf32> to vector<8x128xf32>
    %10 = arith.addf %9, %8 : vector<8x128xf32>
    %11 = vector.extract_strided_slice %1 {offsets = [0, 1], sizes = [8, 1], strides = [1, 1]} : vector<8x8xf32> to vector<8x1xf32>
    %12 = vector.extract_strided_slice %2 {offsets = [1, 0], sizes = [1, 128], strides = [1, 1]} : vector<8x128xf32> to vector<1x128xf32>
    %13 = vector.broadcast %11 : vector<8x1xf32> to vector<8x128xf32>
    %14 = vector.broadcast %12 : vector<1x128xf32> to vector<8x128xf32>
    %15 = arith.mulf %13, %14 : vector<8x128xf32>
    %16 = arith.addf %10, %15 : vector<8x128xf32>
    %17 = vector.extract_strided_slice %1 {offsets = [0, 2], sizes = [8, 1], strides = [1, 1]} : vector<8x8xf32> to vector<8x1xf32>
    %18 = vector.extract_strided_slice %2 {offsets = [2, 0], sizes = [1, 128], strides = [1, 1]} : vector<8x128xf32> to vector<1x128xf32>
    %19 = vector.broadcast %17 : vector<8x1xf32> to vector<8x128xf32>
    %20 = vector.broadcast %18 : vector<1x128xf32> to vector<8x128xf32>
    %21 = arith.mulf %19, %20 : vector<8x128xf32>
    %22 = arith.addf %16, %21 : vector<8x128xf32>
    %23 = vector.extract_strided_slice %1 {offsets = [0, 3], sizes = [8, 1], strides = [1, 1]} : vector<8x8xf32> to vector<8x1xf32>
    %24 = vector.extract_strided_slice %2 {offsets = [3, 0], sizes = [1, 128], strides = [1, 1]} : vector<8x128xf32> to vector<1x128xf32>
    %25 = vector.broadcast %23 : vector<8x1xf32> to vector<8x128xf32>
    %26 = vector.broadcast %24 : vector<1x128xf32> to vector<8x128xf32>
    %27 = arith.mulf %25, %26 : vector<8x128xf32>
    %28 = arith.addf %22, %27 : vector<8x128xf32>
    %29 = vector.extract_strided_slice %1 {offsets = [0, 4], sizes = [8, 1], strides = [1, 1]} : vector<8x8xf32> to vector<8x1xf32>
    %30 = vector.extract_strided_slice %2 {offsets = [4, 0], sizes = [1, 128], strides = [1, 1]} : vector<8x128xf32> to vector<1x128xf32>
    %31 = vector.broadcast %29 : vector<8x1xf32> to vector<8x128xf32>
    %32 = vector.broadcast %30 : vector<1x128xf32> to vector<8x128xf32>
    %33 = arith.mulf %31, %32 : vector<8x128xf32>
    %34 = arith.addf %28, %33 : vector<8x128xf32>
    %35 = vector.extract_strided_slice %1 {offsets = [0, 5], sizes = [8, 1], strides = [1, 1]} : vector<8x8xf32> to vector<8x1xf32>
    %36 = vector.extract_strided_slice %2 {offsets = [5, 0], sizes = [1, 128], strides = [1, 1]} : vector<8x128xf32> to vector<1x128xf32>
    %37 = vector.broadcast %35 : vector<8x1xf32> to vector<8x128xf32>
    %38 = vector.broadcast %36 : vector<1x128xf32> to vector<8x128xf32>
    %39 = arith.mulf %37, %38 : vector<8x128xf32>
    %40 = arith.addf %34, %39 : vector<8x128xf32>
    %41 = vector.extract_strided_slice %1 {offsets = [0, 6], sizes = [8, 1], strides = [1, 1]} : vector<8x8xf32> to vector<8x1xf32>
    %42 = vector.extract_strided_slice %2 {offsets = [6, 0], sizes = [1, 128], strides = [1, 1]} : vector<8x128xf32> to vector<1x128xf32>
    %43 = vector.broadcast %41 : vector<8x1xf32> to vector<8x128xf32>
    %44 = vector.broadcast %42 : vector<1x128xf32> to vector<8x128xf32>
    %45 = arith.mulf %43, %44 : vector<8x128xf32>
    %46 = arith.addf %40, %45 : vector<8x128xf32>
    %47 = vector.extract_strided_slice %1 {offsets = [0, 7], sizes = [8, 1], strides = [1, 1]} : vector<8x8xf32> to vector<8x1xf32>
    %48 = vector.extract_strided_slice %2 {offsets = [7, 0], sizes = [1, 128], strides = [1, 1]} : vector<8x128xf32> to vector<1x128xf32>
    %49 = vector.broadcast %47 : vector<8x1xf32> to vector<8x128xf32>
    %50 = vector.broadcast %48 : vector<1x128xf32> to vector<8x128xf32>
    %51 = arith.mulf %49, %50 : vector<8x128xf32>
    %52 = arith.addf %46, %51 : vector<8x128xf32>
    %cst = arith.constant 0.000000e+00 : f32
    %53 = vector.broadcast %cst : f32 to vector<8x128xf32>
    %54 = arith.maximumf %52, %53 : vector<8x128xf32>
    %c0_5 = arith.constant 0 : index
    %c0_6 = arith.constant 0 : index
    %55 = vector.load %arg4[%c0_5, %c0_6] : memref<128x128xf32, #tpu.memory_space<vmem>>, vector<128x128xf32>
    %cst_7 = arith.constant dense<0.000000e+00> : vector<8x128xf32>
    %56 = tpu.matmul %54, %55, %cst_7 {dimension_numbers = #tpu.dot_dimension_numbers<[1], [0], [0], [1], [0, 0, 1, 1], [], []>} : vector<8x128xf32>, vector<128x128xf32>, vector<8x128xf32> -> vector<8x128xf32>
    %c0_8 = arith.constant 0 : index
    %c0_9 = arith.constant 0 : index
    %57 = vector.load %arg5[%c0_8, %c0_9] : memref<1x128xf32, #tpu.memory_space<vmem>>, vector<1x128xf32>
    %58 = vector.broadcast %57 : vector<1x128xf32> to vector<8x128xf32>
    %59 = arith.addf %56, %58 : vector<8x128xf32>
    %c0_10 = arith.constant 0 : index
    %c0_11 = arith.constant 0 : index
    %60 = vector.load %arg6[%c0_10, %c0_11] : memref<8x128xf32, #tpu.memory_space<vmem>>, vector<8x128xf32>
    tpu.vector_store %arg6[%c0_10, %c0_11], %59 {strides = array<i32>} : memref<8x128xf32, #tpu.memory_space<vmem>>, vector<8x128xf32>,
    return
  }
  func.func @transform_0(%arg0: i32) -> (i32, i32) {
    %c0_i32 = arith.constant 0 : i32
    %c0_i32_0 = arith.constant 0 : i32
    return %arg0, %c0_i32 : i32, i32
  }
  func.func @transform_1(%arg0: i32) -> (i32, i32) {
    %c0_i32 = arith.constant 0 : i32
    %c0_i32_0 = arith.constant 0 : i32
    %c0_i32_1 = arith.constant 0 : i32
    return %c0_i32, %c0_i32_0 : i32, i32
  }
  func.func @transform_2(%arg0: i32) -> (i32, i32) {
    %c0_i32 = arith.constant 0 : i32
    %c0_i32_0 = arith.constant 0 : i32
    %c0_i32_1 = arith.constant 0 : i32
    return %c0_i32, %c0_i32_0 : i32, i32
  }
  func.func @transform_3(%arg0: i32) -> (i32, i32) {
    %c0_i32 = arith.constant 0 : i32
    %c0_i32_0 = arith.constant 0 : i32
    %c0_i32_1 = arith.constant 0 : i32
    return %c0_i32, %c0_i32_0 : i32, i32
  }
  func.func @transform_4(%arg0: i32) -> (i32, i32) {
    %c0_i32 = arith.constant 0 : i32
    %c0_i32_0 = arith.constant 0 : i32
    %c0_i32_1 = arith.constant 0 : i32
    return %c0_i32, %c0_i32_0 : i32, i32
  }
  func.func @transform_5(%arg0: i32) -> (i32, i32) {
    %c0_i32 = arith.constant 0 : i32
    %c0_i32_0 = arith.constant 0 : i32
    return %arg0, %c0_i32 : i32, i32
  }
}

</mosaic_0001>

<bundles_post_ra>
// kernel: tpu_custom_call.1
= control target key start
LH: loop header
LB: loop body
LE: loop exit
PB: predicated region body
PF: predicated region fallthrough
CT: control target
= control target key end

     0   :  { %10 = vsyncpa [#allocation3], 0  ;;  %s506_s0 = inlined_call_operand.hbm [shape: bf16[8,8], index: 0, kind: input, shape index: {}]   ;;  %s507_s1 = inlined_call_operand.hbm [shape: f32[8,128], index: 1, kind: input, shape index: {}]   ;;  %s508_s2 = inlined_call_operand.vmem [shape: f32[1,128], index: 2, kind: input, shape index: {}]   ;;  %s509_s3 = inlined_call_operand.hbm [shape: f32[128,128], index: 3, kind: input, shape index: {}]   ;;  %s510_s4 = inlined_call_operand.vmem [shape: f32[1,128], index: 4, kind: input, shape index: {}]   ;;  %s511_s5 = inlined_call_operand.hbm [shape: f32[8,128], index: 5, kind: output, shape index: {}]  }
   0x1   :  { %11 = vsyncpa [#allocation6], 0 }
   0x2   :  { %12 = vsyncpa [#allocation4], 0  ;;  %s425_s18 = smov [#allocation5]   ;;  %s426_s20 = smov [#allocation2]  }
   0x3   :  { %s29_s19 = sshll.u32 %s425_s18, 4  ;;  %s19_s21 = sshll.u32 %s426_s20, 4  ;;  %s30_s19 = int_to_ptr.vmem [resolvable:$true] %s29_s19  ;;  %s20_s21 = int_to_ptr.vmem [resolvable:$true] %s19_s21 }
   0x4   :  { %s347_s22 = scalar_lea.vmem %s30_s19, 128  ;;  %p352_p1 = scmp.lt.s32.totalorder %s30_s19, %s30_s19 }
   0x5   :  { %p348_p0 = scmp.ne.s32.totalorder %s30_s19, %s347_s22  ;;  %p353_p2 = scmp.lt.s32.totalorder %s347_s22, %s347_s22 }
   0x7   :  { %p354_p3 = por %p353_p2, %p352_p1 }
   0x9   :  { %p355_p4 = pnand %p354_p3, %p348_p0 }
   0xb   :  { %358 = shalt.err (!%p355_p4)
}
   0xc   :  { %32 = dma.hbm_to_vmem [thread:$0]  %s507_s1, 128, %s30_s19, [#allocation6]  }
   0xd   :  { %s367_s25 = scalar_lea.vmem %s20_s21, 64  ;;  %p372_p6 = scmp.lt.s32.totalorder %s20_s21, %s20_s21 }
   0xe   :  { %p368_p5 = scmp.ne.s32.totalorder %s20_s21, %s367_s25  ;;  %p373_p7 = scmp.lt.s32.totalorder %s367_s25, %s367_s25 }
  0x10   :  { %p374_p8 = por %p373_p7, %p372_p6 }
  0x12   :  { %p375_p9 = pnand %p374_p8, %p368_p5 }
  0x14   :  { %378 = shalt.err (!%p375_p9)
}
  0x15   :  { %22 = dma.hbm_to_vmem [thread:$0]  %s506_s0, 64, %s20_s21, [#allocation3]  }
  0x16   :  { %s427_s28 = smov [#allocation7]  }
  0x17   :  { %s40_s29 = sshll.u32 %s427_s28, 4  ;;  %s41_s29 = int_to_ptr.vmem [resolvable:$true] %s40_s29 }
  0x18   :  { %s387_s30 = scalar_lea.vmem %s41_s29, 2048  ;;  %p392_p11 = scmp.lt.s32.totalorder %s41_s29, %s41_s29 }
  0x19   :  { %p388_p10 = scmp.ne.s32.totalorder %s41_s29, %s387_s30  ;;  %p393_p12 = scmp.lt.s32.totalorder %s387_s30, %s387_s30 }
  0x1b   :  { %p394_p13 = por %p393_p12, %p392_p11 }
  0x1d   :  { %p395_p0 = pnand %p394_p13, %p388_p10 }
  0x1f   :  { %398 = shalt.err (!%p395_p0)
}
  0x20   :  { %s428_s1 = smov 128   ;;  %s429_s6 = smov 8  }
  0x21   :  { %46 = dma.hbm_to_vmem [thread:$0]  %s509_s3, 2048, %s41_s29, [#allocation6], %s428_s1, %s428_s1, %s429_s6  }
  0x22   :  { %419 = dma.done.wait [#allocation3], 64  }
  0x23   :  { %420 = vsyncadd [#allocation3], 4294967232 }
  0x24   :  { %421 = dma.done.wait [#allocation6], 2176  }
  0x25   :  { %422 = vsyncadd [#allocation6], 4294965120  ;;  %v430_v0 = vmov 2   ;;  %v431_v1 = vmov 0   ;;  %v432_v2 = vmov 0.0   ;;  %v165_v4 = vld [vmem:[#allocation7 + $0x78] sm:$0xff]  ;;  %v67_v27 = vlaneseq }
  0x26   :  { %332 = vset.pattern.permute.xlu1 %v430_v0  ;;  %330 = vset.pattern.permute.xlu0 %v431_v1  ;;  %v58_v3 = vld [vmem:[#allocation2] sm:$0xf]  ;;  %v163_v7 = vld [vmem:[#allocation7 + $0x68] sm:$0xff]  ;;  %v433_v8 = vmov 3   ;;  %v434_v9 = vmov 1   ;;  %v162_v10 = vld [vmem:[#allocation7 + $0x60] sm:$0xff] }
  0x27   :  { %279 = vmatprep.subr.mxu0 %v432_v2  ;;  %v59_v5 = vunpack.c.l.bf16 %v58_v3  ;;  %v164_v6 = vld [vmem:[#allocation7 + $0x70] sm:$0xff]  ;;  %v161_v11 = vld [vmem:[#allocation7 + $0x58] sm:$0xff]  ;;  %v435_v12 = vmov 4   ;;  %v436_v13 = vmov 5   ;;  %v159_v15 = vld [vmem:[#allocation7 + $0x48] sm:$0xff]  ;;  %v437_v16 = vmov 6  }
  0x28   :  { %280 = vmatpush3.msra.mxu0 %v165_v4  ;;  %v160_v14 = vld [vmem:[#allocation7 + $0x50] sm:$0xff]  ;;  %v158_v17 = vld [vmem:[#allocation7 + $0x40] sm:$0xff]  ;;  %v157_v18 = vld [vmem:[#allocation7 + $0x38] sm:$0xff]  ;;  %v438_v19 = vmov 7   ;;  %vm439_vm0 = vmmov 0   ;;  %v68_v28 = vshrl.u32 %v67_v27, 7 }
  0x29   :  { %281 = vmatprep.subr.mxu0 %v432_v2  ;;  %90 = vperm.xlu1 %332, %v59_v5   ;;  %v156_v20 = vld [vmem:[#allocation7 + $0x30] sm:$0xff]  ;;  %v155_v21 = vld [vmem:[#allocation7 + $0x28] sm:$0xff]  ;;  %v154_v22 = vld [vmem:[#allocation7 + $0x20] sm:$0xff]  ;;  %s440_s10 = smov [#allocation8]  }
  0x2a   :  { %64 = vperm.xlu0 %330, %v59_v5   ;;  %282 = vmatpush3.msra.mxu0 %v164_v6  ;;  %v153_v23 = vld [vmem:[#allocation7 + $0x18] sm:$0xff]  ;;  %v152_v24 = vld [vmem:[#allocation7 + $0x10] sm:$0xff]  ;;  %v151_v25 = vld [vmem:[#allocation7 + $0x8] sm:$0xff]  ;;  %v69_v29 = vsub.s32 0, %v68_v28  ;;  %v85_v32 = vsub.s32 1, %v68_v28  ;;  %v95_v33 = vsub.s32 2, %v68_v28 }
  0x2b   :  { %283 = vmatprep.subr.mxu0 %v432_v2  ;;  %311 = vmatprep.mubr.msk.f32.mxu0 %vm439_vm0, %v432_v2  ;;  %v150_v26 = vld [vmem:[#allocation7] sm:$0xff]  ;;  %v60_v30 = vld [vmem:[#allocation5] sm:$0xff]  ;;  %v260_v36 = vld [vmem:[%s508_s2] ss:$0 sm:$0xff]  ;;  %v105_v38 = vsub.s32 3, %v68_v28  ;;  %v115_v40 = vsub.s32 4, %v68_v28 }
  0x2c   :  { %284 = vmatpush3.msra.mxu0 %v163_v7  ;;  %v70_v31 = vrot.slane %v60_v30, %v69_v29  ;;  %v86_v39 = vrot.slane %v60_v30, %v85_v32  ;;  %v96_v41 = vrot.slane %v60_v30, %v95_v33  ;;  %v125_v45 = vsub.s32 5, %v68_v28  ;;  %s250_s11 = sshll.u32 %s440_s10, 4  ;;  %s251_s11 = int_to_ptr.vmem [resolvable:$true] %s250_s11 }
  0x2d   :  { %333 = vset.pattern.permute.xlu1 %v433_v8  ;;  %285 = vmatprep.subr.mxu0 %v432_v2  ;;  %v106_v46 = vrot.slane %v60_v30, %v105_v38  ;;  %v116_v48 = vrot.slane %v60_v30, %v115_v40  ;;  %v135_v52 = vsub.s32 6, %v68_v28  ;;  %v145_v61 = vsub.s32 7, %v68_v28  ;;  %v261_v8 = vld [vmem:[%s510_s4] ss:$0 sm:$0xff]  ;;  %s399_s12 = scalar_lea.vmem %s251_s11, 128  ;;  %p404_p2 = scmp.lt.s32.totalorder %s251_s11, %s251_s11 }
  0x2e   :  { %331 = vset.pattern.permute.xlu0 %v434_v9  ;;  %100 = vperm.xlu1 %333, %v59_v5   ;;  %v126_v51 = vrot.slane %v60_v30, %v125_v45  ;;  %p400_p1 = scmp.ne.s32.totalorder %s251_s11, %s399_s12  ;;  %p405_p3 = scmp.lt.s32.totalorder %s399_s12, %s399_s12 }
  0x2f   :  { %80 = vperm.xlu0 %331, %v59_v5   ;;  %286 = vmatpush3.msra.mxu0 %v162_v10  ;;  %v136_v60 = vrot.slane %v60_v30, %v135_v52 }
  0x30   :  { %287 = vmatprep.subr.mxu0 %v432_v2  ;;  %p406_p4 = por %p405_p3, %p404_p2 }
  0x31   :  { %288 = vmatpush3.msra.mxu0 %v161_v11 }
  0x32   :  { %334 = vset.pattern.permute.xlu1 %v435_v12  ;;  %289 = vmatprep.subr.mxu0 %v432_v2  ;;  %p407_p5 = pnand %p406_p4, %p400_p1 }
  0x33   :  { %335 = vset.pattern.permute.xlu0 %v436_v13  ;;  %110 = vperm.xlu1 %334, %v59_v5  }
  0x34   :  { %120 = vperm.xlu0 %335, %v59_v5   ;;  %290 = vmatpush3.msra.mxu0 %v160_v14 }
  0x35   :  { %291 = vmatprep.subr.mxu0 %v432_v2 }
  0x36   :  { %292 = vmatpush3.msra.mxu0 %v159_v15 }
  0x37   :  { %336 = vset.pattern.permute.xlu1 %v437_v16  ;;  %293 = vmatprep.subr.mxu0 %v432_v2 }
  0x38   :  { %130 = vperm.xlu1 %336, %v59_v5   ;;  %338 = vset.pattern.permute.xlu0 %v438_v19 }
  0x39   :  { %294 = vmatpush3.msra.mxu0 %v158_v17 }
  0x3a   :  { %295 = vmatprep.subr.mxu0 %v432_v2 }
  0x3b   :  { %296 = vmatpush3.msra.mxu0 %v157_v18 }
  0x3c   :  { %337 = vset.pattern.permute.xlu1 %v438_v19  ;;  %297 = vmatprep.subr.mxu0 %v432_v2 }
  0x3d   :  { %140 = vperm.xlu1 %337, %v59_v5   ;;  %298 = vmatpush3.msra.mxu0 %v156_v20 }
  0x3e   :  { %299 = vmatprep.subr.mxu0 %v432_v2 }
  0x3f   :  { %300 = vmatpush3.msra.mxu0 %v155_v21 }
  0x40   :  { %301 = vmatprep.subr.mxu0 %v432_v2 }
  0x41   :  { %302 = vmatpush3.msra.mxu0 %v154_v22 }
  0x42   :  { %303 = vmatprep.subr.mxu0 %v432_v2 }
  0x43   :  { %304 = vmatpush3.msra.mxu0 %v153_v23 }
  0x44   :  { %305 = vmatprep.subr.mxu0 %v432_v2 }
  0x45   :  { %306 = vmatpush3.msra.mxu0 %v152_v24 }
  0x46   :  { %307 = vmatprep.subr.mxu0 %v432_v2 }
  0x47   :  { %308 = vmatpush3.msra.mxu0 %v151_v25 }
  0x48   :  { %309 = vmatprep.subr.mxu0 %v432_v2  ;;  %v146_v2 = vrot.slane %v60_v30, %v145_v61 }
  0x49   :  { %310 = vmatpush3.msra.mxu0 %v150_v26 }
  0xa4   :  { %v91_v34 = vpop.permute.xlu1 %90 }
  0xa5   :  { %v65_v35 = vpop.permute.xlu0 %64  ;;  %v97_v49 = vmul.f32 %v96_v41, %v91_v34 }
  0xa6   :  { %v71_v37 = vmul.f32 %v70_v31, %v65_v35 }
  0xa8   :  { %v78_v42 = vadd.f32 %v260_v36, %v71_v37 }
  0xa9   :  { %v101_v43 = vpop.permute.xlu1 %100 }
  0xaa   :  { %v81_v44 = vpop.permute.xlu0 %80  ;;  %v107_v53 = vmul.f32 %v106_v46, %v101_v43 }
  0xab   :  { %v87_v47 = vmul.f32 %v86_v39, %v81_v44 }
  0xad   :  { %v88_v50 = vadd.f32 %v87_v47, %v78_v42 }
  0xae   :  { %v111_v55 = vpop.permute.xlu1 %110 }
  0xaf   :  { %v98_v54 = vadd.f32 %v97_v49, %v88_v50  ;;  %v121_v56 = vpop.permute.xlu0 %120  ;;  %v117_v57 = vmul.f32 %v116_v48, %v111_v55 }
  0xb0   :  { %v127_v59 = vmul.f32 %v126_v51, %v121_v56 }
  0xb1   :  { %v108_v58 = vadd.f32 %v107_v53, %v98_v54 }
  0xb3   :  { %v118_v62 = vadd.f32 %v117_v57, %v108_v58  ;;  %v131_v63 = vpop.permute.xlu1 %130 }
  0xb4   :  { %v137_v1 = vmul.f32 %v136_v60, %v131_v63 }
  0xb5   :  { %v128_v0 = vadd.f32 %v127_v59, %v118_v62 }
  0xb7   :  { %v138_v4 = vadd.f32 %v137_v1, %v128_v0 }
  0xb8   :  { %v141_v3 = vpop.permute.xlu1 %140 }
  0xb9   :  { %v147_v5 = vmul.f32 %v146_v2, %v141_v3 }
  0xbb   :  { %v148_v6 = vadd.f32 %v147_v5, %v138_v4 }
  0xbd   :  { %v149_v7 = vmax.f32 %v148_v6, 0.0 }
  0xbf   :  { %312 = vmatmul.mubr.f32.vlgmr.msra.gmra.mxu0 %v149_v7 }
 0x17f   :  { %v239_v9 = vpop.f32.mrf.mxu0 }
 0x180   :  { %v240_v10 = vadd.f32 %v261_v8, %v239_v9 }
 0x181   :  { %v313_v11 = vpop.f32.mrf.mxu0 }
 0x182   :  { %243 = vst [vmem:[#allocation8] sm:$0xff] %v240_v10 }
 0x183   :  { %410 = shalt.err (!%p407_p5)
}
 0x184   :  { %253 = dma.vmem_to_hbm [thread:$0]  %s251_s11, 128, %s511_s5, [#allocation4]  }
 0x185   :  { %423 = dma.done.wait [#allocation4], 128  }
 0x186   :  { %424 = vsyncadd [#allocation4], 4294967168 }
 0x187   :  { %257 = vsyncpa [#allocation3], 1 }
 0x188   :  { %258 = vsyncpa [#allocation6], 1 }
 0x189   :  { %259 = vsyncpa [#allocation4], 1 }

</bundles_post_ra>
